<compile_context>
chip_gen: v5e
topology: v5e:2x2
jax: 0.10.0
libtpu: 0.0.40
codegen_flags: <defaults>
</compile_context>

<pallas_src>
import math
from functools import partial

import jax
import jax.numpy as jnp
from jax.experimental import pallas as pl
from jax.experimental.pallas import tpu as pltpu

_BN_EPS = 1e-5
_BN_INV = 1.0 / math.sqrt(1.0 + _BN_EPS)   # eval-mode BatchNorm, default stats


# ------------------------------ fused kernel --------------------------------

def _gcnpool_kernel(x_ref, wt_ref, wc_ref, bias_ref, wf_ref, watt_ref, bv_ref,
                    out_ref, *, Kt, dil, T, N):
    f32 = jnp.float32
    x = x_ref[0]                                   # (L, N*Cin)
    L = x.shape[0]
    L1 = L - dil * (Kt - 1)

    # ---- stage 1: dilated (1,Kt) time-conv + GLU, all nodes at once --------
    #   wt_ref[k]      = kron(I_N, Wt1_tap_k)   (gate 1)
    #   wt_ref[Kt + k] = kron(I_N, Wt2_tap_k)   (gate 2)
    #   wt_ref[2*Kt]   = kron(I_N, Wr)          (residual 1x1 conv)
    pre1 = jnp.dot(x[0:L1, :], wt_ref[0], preferred_element_type=f32)
    pre2 = jnp.dot(x[0:L1, :], wt_ref[Kt], preferred_element_type=f32)
    for k in range(1, Kt):
        xs = x[k * dil:k * dil + L1, :]
        pre1 = pre1 + jnp.dot(xs, wt_ref[k], preferred_element_type=f32)
        pre2 = pre2 + jnp.dot(xs, wt_ref[Kt + k], preferred_element_type=f32)
    H = jnp.tanh(pre1 + bias_ref[0]) * jax.nn.sigmoid(pre2 + bias_ref[1])  # (L1, N*C)

    # ---- stage 2: graph diffusion folded into per-tap (1,Kt) conv weights ---
    #   wc_ref[k] / wc_ref[Kt+k] = Wdiff @ kron(I_N, Wm{1,2}_tap_k)  (N*C, N*C)
    q1 = jnp.dot(H[0:T, :], wc_ref[0], preferred_element_type=f32)
    q2 = jnp.dot(H[0:T, :], wc_ref[Kt], preferred_element_type=f32)
    for k in range(1, Kt):
        hs = H[k:k + T, :]
        q1 = q1 + jnp.dot(hs, wc_ref[k], preferred_element_type=f32)
        q2 = q2 + jnp.dot(hs, wc_ref[Kt + k], preferred_element_type=f32)
    G_all = jnp.tanh(q1 + bias_ref[2]) * jax.nn.sigmoid(q2 + bias_ref[3])  # (T, N*C)

    # ---- temporal attention coefficients (TATT_1) ---------------------------
    f12 = jnp.dot(G_all, wf_ref[...], preferred_element_type=f32)          # (T, N+C)
    m1 = jnp.dot(f12[:, :N], watt_ref[...], preferred_element_type=f32)    # (T, C)
    logits = jax.lax.dot_general(m1, f12[:, N:], (((1,), (1,)), ((), ())),
                                 preferred_element_type=f32)               # (T, T)
    logits = jnp.dot(bv_ref[1], jax.nn.sigmoid(logits + bv_ref[0]),
                     preferred_element_type=f32)     # v is pre-scaled by _BN_INV
    logits = logits - jnp.max(logits, axis=-1, keepdims=True)
    e = jnp.exp(logits)
    coefs = e * pl.reciprocal(jnp.sum(e, axis=-1, keepdims=True), approx=True)

    # ---- attention apply + cropped residual 1x1 conv + BatchNorm2d (eval) ---
    res = jnp.dot(x[L - T:, :], wt_ref[2 * Kt], preferred_element_type=f32) \
        + bias_ref[4]                                                      # (T, N*C)
    attn = jnp.dot(coefs, G_all, preferred_element_type=f32)               # (T, N*C)
    out_ref[0] = (attn + res) * _BN_INV


def _bcast_spec(a):
    nd = a.ndim
    return pl.BlockSpec(a.shape, lambda b, _nd=nd: (0,) * _nd)


def gcnpool_pallas(x_in, wt_all, wc_all, bias_blk, wf_pack, w_tatt, bv_tatt,
                   *, Kt, dil, N):
    B, L, NCin = x_in.shape
    NC = wc_all.shape[-1]
    L1 = L - dil * (Kt - 1)
    T = L1 - (Kt - 1)

    kernel = partial(_gcnpool_kernel, Kt=Kt, dil=dil, T=T, N=N)
    weights = (wt_all, wc_all, bias_blk, wf_pack, w_tatt, bv_tatt)

    return pl.pallas_call(
        kernel,
        out_shape=jax.ShapeDtypeStruct((B, T, NC), jnp.float32),
        grid=(B,),
        in_specs=[pl.BlockSpec((1, L, NCin), lambda b: (b, 0, 0))]
                 + [_bcast_spec(w) for w in weights],
        out_specs=pl.BlockSpec((1, T, NC), lambda b: (b, 0, 0)),
        compiler_params=pltpu.CompilerParams(
            dimension_semantics=("parallel",)),
    )(x_in, *weights)


# ------------------------------- JAX wrapper ---------------------------------

@partial(jax.jit, static_argnames=("Kt", "order"))
def gcnpool_forward(x, supports, params, Kt, order):
    B, Cin, N, L = x.shape
    C = params["Wr"].shape[1]                       # c_out
    dil = 2
    L1 = L - dil * (Kt - 1)
    T = L1 - (Kt - 1)

    eyeN = jnp.eye(N, dtype=jnp.float32)
    eyeC = jnp.eye(C, dtype=jnp.float32)

    # input re-laid out as (B, L, N*Cin): 32-lane rows instead of 4-lane
    x_in = jnp.transpose(x, (0, 3, 2, 1)).reshape(B, L, N * Cin)

    # --- stage-1 per-tap block-diagonal gate weights + residual 1x1 weight ---
    Wt_taps = params["Wt"].reshape(Kt, Cin, 2 * C)             # [k, cin, 2C]
    wt1 = jnp.einsum('nm,kio->knimo', eyeN,
                     Wt_taps[:, :, :C]).reshape(Kt, N * Cin, N * C)
    wt2 = jnp.einsum('nm,kio->knimo', eyeN,
                     Wt_taps[:, :, C:]).reshape(Kt, N * Cin, N * C)
    wr_blk = jnp.kron(eyeN, params["Wr"])                      # (N*Cin, N*C)
    wt_all = jnp.concatenate([wt1, wt2, wr_blk[None]], axis=0)  # (2Kt+1, N*Cin, N*C)

    # --- graph-diffusion operators, folded into stage-2 per-tap weights ------
    mats = [eyeN]
    for A in supports:
        P = A
        mats.append(P)
        for _ in range(2, order + 1):
            P = jnp.dot(P, A)
            mats.append(P)
    M = jnp.stack(mats, axis=0)                                # (G, N, N)
    Gd = M.shape[0]
    Wm_taps = params["Wm"].reshape(Kt, Gd, C, 2 * C)           # [k, g, c, 2C]
    # Wcomb_k[v*C+c, n*C+o] = sum_g M_g[n, v] * Wm_tap_k[g*C+c, o]
    comb = jnp.einsum('gnv,kgcd->kvcnd', M, Wm_taps)           # (Kt, N, C, N, 2C)
    wc1b = comb[..., :C].reshape(Kt, N * C, N * C)
    wc2b = comb[..., C:].reshape(Kt, N * C, N * C)
    wc_all = jnp.concatenate([wc1b, wc2b], axis=0)             # (2Kt, N*C, N*C)

    # --- biases tiled over nodes: bt1, bt2, bm1, bm2, br ---------------------
    bt, bm, br = params["bt"][0], params["bm"][0], params["br"][0]
    bias_blk = jnp.stack([jnp.tile(bt[:C], N), jnp.tile(bt[C:], N),
                          jnp.tile(bm[:C], N), jnp.tile(bm[C:], N),
                          jnp.tile(br, N)], axis=0)[:, None, :]   # (5, 1, N*C)

    # --- TATT_1: both 1x1 convs packed into one (N*C, N+C) matmul ------------
    wc1_att = params["wc1"][:, 0, 0]                           # (C,)
    wc2_att = params["wc2"][0, :, 0]                           # (N,)
    Wf1 = jnp.kron(eyeN, wc1_att.reshape(C, 1))                # (N*C, N)
    Wf2 = jnp.kron(wc2_att.reshape(N, 1), eyeC)                # (N*C, C)
    wf_pack = jnp.concatenate([Wf1, Wf2], axis=1)              # (N*C, N+C)
    bv_tatt = jnp.stack([params["b_tatt"], params["v_tatt"] * _BN_INV], axis=0)

    out = gcnpool_pallas(x_in, wt_all, wc_all, bias_blk, wf_pack,
                         params["w_tatt"], bv_tatt, Kt=Kt, dil=dil, N=N)
    # (B, T, N*C) -> (B, C, N, T)   (tiny final relayout, ~8 KB)
    return jnp.transpose(out.reshape(B, T, N, C), (0, 3, 2, 1))


# ----------------------- helpers + pure-JAX reference ------------------------

def _im2col_time(x, Kt, dilation):
    # x: [B, C, N, L]  ->  cols: [B*N*Lo, Kt*C], column order (k, c)
    B, C, N, L = x.shape
    Lo = L - dilation * (Kt - 1)
    cols = jnp.stack([x[:, :, :, k * dilation:k * dilation + Lo] for k in range(Kt)],
                     axis=1)                                   # [B, Kt, C, N, Lo]
    cols = jnp.transpose(cols, (0, 3, 4, 1, 2)).reshape(B * N * Lo, Kt * C)
    return cols, Lo


def _flatten_conv_weight(W):
    # torch layout [Cout, Cin, 1, Kt]  ->  [Kt*Cin, Cout] matching _im2col_time
    Cout, Cin, _, Kt = W.shape
    return jnp.transpose(W[:, :, 0, :], (2, 1, 0)).reshape(Kt * Cin, Cout)


@partial(jax.jit, static_argnames=("Kt", "order"))
def _reference_forward(x, supports, params, Kt, order):
    # Direct XLA port of the PyTorch module (eval mode), for verification.
    B, Cin, N, L = x.shape
    C = params["Wr"].shape[1]
    res = jnp.einsum('bcnl,cd->bdnl', x, params["Wr"]) \
        + params["br"][0][None, :, None, None]
    cols, L1 = _im2col_time(x, Kt, 2)
    y = (cols @ params["Wt"] + params["bt"]).reshape(B, N, L1, 2 * C)
    y = jnp.transpose(y, (0, 3, 1, 2))
    h = jnp.tanh(y[:, :C]) * jax.nn.sigmoid(y[:, C:])
    out_list = [h]
    for A in supports:
        x1 = jnp.einsum('wv,bcvl->bcwl', A, h)
        out_list.append(x1)
        for _ in range(2, order + 1):
            x1 = jnp.einsum('wv,bcvl->bcwl', A, x1)
            out_list.append(x1)
    hcat = jnp.concatenate(out_list, axis=1)
    cols2, T = _im2col_time(hcat, Kt, 1)
    z = (cols2 @ params["Wm"] + params["bm"]).reshape(B, N, T, 2 * C)
    z = jnp.transpose(z, (0, 3, 1, 2))
    g = jnp.tanh(z[:, :C]) * jax.nn.sigmoid(z[:, C:])
    wc1 = params["wc1"][:, 0, 0]
    wc2 = params["wc2"][0, :, 0]
    f1 = jnp.einsum('c,bcnt->btn', wc1, g)
    f2 = jnp.einsum('n,bcnt->bct', wc2, g)
    logits = jax.nn.sigmoid(jnp.einsum('btn,nc,bcq->btq', f1, params["w_tatt"], f2)
                            + params["b_tatt"])
    logits = jnp.einsum('tq,bqs->bts', params["v_tatt"], logits) * _BN_INV
    coefs = jax.nn.softmax(logits, axis=-1)
    attn = jnp.einsum('bcnl,bql->bcnq', g, coefs)
    return (attn + res[:, :, :, -T:]) * _BN_INV


# ----------------------------- example / test --------------------------------

if __name__ == "__main__":
    B, c_in, c_out = 2, 4, 8
    num_nodes, tem_size, Kt = 8, 16, 3
    support_len, order = 3, 2
    L_in = tem_size + 3 * (Kt - 1)            # 22: width shrinks by 3*(Kt-1)

    key = jax.random.PRNGKey(0)
    ks = jax.random.split(key, 16)

    def u(k, shape, scale=0.2):
        return jax.random.uniform(k, shape, jnp.float32, -scale, scale)

    c_gcn_in = (order * support_len + 1) * c_out

    params = {
        # conv1 (1x1): torch weight [c_out, c_in, 1, 1] -> [c_in, c_out]
        "Wr": u(ks[0], (c_out, c_in, 1, 1))[:, :, 0, 0].T,
        "br": u(ks[1], (1, c_out)),
        # time_conv: torch weight [2*c_out, c_in, 1, Kt] -> [Kt*c_in, 2*c_out]
        "Wt": _flatten_conv_weight(u(ks[2], (2 * c_out, c_in, 1, Kt))),
        "bt": u(ks[3], (1, 2 * c_out)),
        # multigcn mlp: [2*c_out, c_gcn_in, 1, Kt] -> [Kt*c_gcn_in, 2*c_out]
        "Wm": _flatten_conv_weight(u(ks[4], (2 * c_out, c_gcn_in, 1, Kt))),
        "bm": u(ks[5], (1, 2 * c_out)),
        # TATT_1 params
        "wc1": u(ks[6], (c_out, 1, 1)),               # conv1 1x1, no bias
        "wc2": u(ks[7], (1, num_nodes, 1)),           # conv2 1x1, no bias
        "w_tatt": u(ks[8], (num_nodes, c_out), 0.3),  # xavier-like
        "b_tatt": jnp.zeros((tem_size, tem_size), jnp.float32),
        "v_tatt": u(ks[9], (tem_size, tem_size), 0.3),
    }

    # three row-normalized random adjacency supports
    supports = []
    for i in range(support_len):
        adj = jax.random.uniform(ks[10 + i], (num_nodes, num_nodes), jnp.float32)
        supports.append(adj / jnp.sum(adj, axis=1, keepdims=True))
    supports = tuple(supports)

    x = jax.random.normal(ks[13], (B, c_in, num_nodes, L_in), jnp.float32)

    out = gcnpool_forward(x, supports, params, Kt=Kt, order=order)
    out = jax.block_until_ready(out)
    assert out.shape == (B, c_out, num_nodes, tem_size)
    assert bool(jnp.all(jnp.isfinite(out)))

    ref = jax.block_until_ready(
        _reference_forward(x, supports, params, Kt=Kt, order=order))
    max_err = float(jnp.max(jnp.abs(out - ref)))
    # 2e-3 tolerance: the only deviation from exact f32 is the EUP approximate
    # reciprocal used for the softmax denominator.
    assert max_err < 2e-3, f"mismatch vs reference: max abs err = {max_err}"

    print("KERNEL_OK")
</pallas_src>

<mosaic_0001>
module attributes {stable_mosaic.version = 11 : i64} {
  func.func @_gcnpool_kernel(%arg0: i32, %arg1: memref<1x22x32xf32, #tpu.memory_space<vmem>>, %arg2: memref<7x32x64xf32, #tpu.memory_space<vmem>>, %arg3: memref<6x64x64xf32, #tpu.memory_space<vmem>>, %arg4: memref<5x1x64xf32, #tpu.memory_space<vmem>>, %arg5: memref<64x16xf32, #tpu.memory_space<vmem>>, %arg6: memref<8x8xf32, #tpu.memory_space<vmem>>, %arg7: memref<2x16x16xf32, #tpu.memory_space<vmem>>, %arg8: memref<1x16x64xf32, #tpu.memory_space<vmem>>) attributes {dimension_semantics = [#tpu.dimension_semantics<parallel>], iteration_bounds = array<i64: 2>, scalar_prefetch = 0 : i64, scratch_operands = 0 : i64, tpu.core_type = #tpu.core_type<tc>, window_params = [{transform_indices = @transform_0, window_bounds = array<i64: 1, 22, 32>}, {pipeline_mode = #tpu.pipeline_mode<synchronous>, transform_indices = @transform_1, window_bounds = array<i64: 7, 32, 64>}, {pipeline_mode = #tpu.pipeline_mode<synchronous>, transform_indices = @transform_2, window_bounds = array<i64: 6, 64, 64>}, {pipeline_mode = #tpu.pipeline_mode<synchronous>, transform_indices = @transform_3, window_bounds = array<i64: 5, 1, 64>}, {pipeline_mode = #tpu.pipeline_mode<synchronous>, transform_indices = @transform_4, window_bounds = array<i64: 64, 16>}, {pipeline_mode = #tpu.pipeline_mode<synchronous>, transform_indices = @transform_5, window_bounds = array<i64: 8, 8>}, {pipeline_mode = #tpu.pipeline_mode<synchronous>, transform_indices = @transform_6, window_bounds = array<i64: 2, 16, 16>}, {transform_indices = @transform_7, window_bounds = array<i64: 1, 16, 64>}]} {
    %c0 = arith.constant 0 : index
    %c0_0 = arith.constant 0 : index
    %c0_1 = arith.constant 0 : index
    %0 = vector.load %arg1[%c0, %c0_0, %c0_1] : memref<1x22x32xf32, #tpu.memory_space<vmem>>, vector<1x22x32xf32>
    %1 = vector.shape_cast %0 : vector<1x22x32xf32> to vector<22x32xf32>
    %2 = vector.extract_strided_slice %1 {offsets = [0, 0], sizes = [18, 32], strides = [1, 1]} : vector<22x32xf32> to vector<18x32xf32>
    %c0_2 = arith.constant 0 : index
    %c0_3 = arith.constant 0 : index
    %c0_4 = arith.constant 0 : index
    %3 = vector.load %arg2[%c0_2, %c0_3, %c0_4] : memref<7x32x64xf32, #tpu.memory_space<vmem>>, vector<1x32x64xf32>
    %4 = vector.shape_cast %3 : vector<1x32x64xf32> to vector<32x64xf32>
    %cst = arith.constant dense<0.000000e+00> : vector<18x64xf32>
    %5 = tpu.matmul %2, %4, %cst {dimension_numbers = #tpu.dot_dimension_numbers<[1], [0], [0], [1], [0, 0, 1, 1], [], []>} : vector<18x32xf32>, vector<32x64xf32>, vector<18x64xf32> -> vector<18x64xf32>
    %6 = vector.extract_strided_slice %1 {offsets = [0, 0], sizes = [18, 32], strides = [1, 1]} : vector<22x32xf32> to vector<18x32xf32>
    %c3 = arith.constant 3 : index
    %c0_5 = arith.constant 0 : index
    %c0_6 = arith.constant 0 : index
    %7 = vector.load %arg2[%c3, %c0_5, %c0_6] : memref<7x32x64xf32, #tpu.memory_space<vmem>>, vector<1x32x64xf32>
    %8 = vector.shape_cast %7 : vector<1x32x64xf32> to vector<32x64xf32>
    %cst_7 = arith.constant dense<0.000000e+00> : vector<18x64xf32>
    %9 = tpu.matmul %6, %8, %cst_7 {dimension_numbers = #tpu.dot_dimension_numbers<[1], [0], [0], [1], [0, 0, 1, 1], [], []>} : vector<18x32xf32>, vector<32x64xf32>, vector<18x64xf32> -> vector<18x64xf32>
    %10 = vector.extract_strided_slice %1 {offsets = [2, 0], sizes = [18, 32], strides = [1, 1]} : vector<22x32xf32> to vector<18x32xf32>
    %c1 = arith.constant 1 : index
    %c0_8 = arith.constant 0 : index
    %c0_9 = arith.constant 0 : index
    %11 = vector.load %arg2[%c1, %c0_8, %c0_9] : memref<7x32x64xf32, #tpu.memory_space<vmem>>, vector<1x32x64xf32>
    %12 = vector.shape_cast %11 : vector<1x32x64xf32> to vector<32x64xf32>
    %cst_10 = arith.constant dense<0.000000e+00> : vector<18x64xf32>
    %13 = tpu.matmul %10, %12, %cst_10 {dimension_numbers = #tpu.dot_dimension_numbers<[1], [0], [0], [1], [0, 0, 1, 1], [], []>} : vector<18x32xf32>, vector<32x64xf32>, vector<18x64xf32> -> vector<18x64xf32>
    %14 = arith.addf %5, %13 : vector<18x64xf32>
    %c4 = arith.constant 4 : index
    %c0_11 = arith.constant 0 : index
    %c0_12 = arith.constant 0 : index
    %15 = vector.load %arg2[%c4, %c0_11, %c0_12] : memref<7x32x64xf32, #tpu.memory_space<vmem>>, vector<1x32x64xf32>
    %16 = vector.shape_cast %15 : vector<1x32x64xf32> to vector<32x64xf32>
    %cst_13 = arith.constant dense<0.000000e+00> : vector<18x64xf32>
    %17 = tpu.matmul %10, %16, %cst_13 {dimension_numbers = #tpu.dot_dimension_numbers<[1], [0], [0], [1], [0, 0, 1, 1], [], []>} : vector<18x32xf32>, vector<32x64xf32>, vector<18x64xf32> -> vector<18x64xf32>
    %18 = arith.addf %9, %17 : vector<18x64xf32>
    %19 = vector.extract_strided_slice %1 {offsets = [4, 0], sizes = [18, 32], strides = [1, 1]} : vector<22x32xf32> to vector<18x32xf32>
    %c2 = arith.constant 2 : index
    %c0_14 = arith.constant 0 : index
    %c0_15 = arith.constant 0 : index
    %20 = vector.load %arg2[%c2, %c0_14, %c0_15] : memref<7x32x64xf32, #tpu.memory_space<vmem>>, vector<1x32x64xf32>
    %21 = vector.shape_cast %20 : vector<1x32x64xf32> to vector<32x64xf32>
    %cst_16 = arith.constant dense<0.000000e+00> : vector<18x64xf32>
    %22 = tpu.matmul %19, %21, %cst_16 {dimension_numbers = #tpu.dot_dimension_numbers<[1], [0], [0], [1], [0, 0, 1, 1], [], []>} : vector<18x32xf32>, vector<32x64xf32>, vector<18x64xf32> -> vector<18x64xf32>
    %23 = arith.addf %14, %22 : vector<18x64xf32>
    %c5 = arith.constant 5 : index
    %c0_17 = arith.constant 0 : index
    %c0_18 = arith.constant 0 : index
    %24 = vector.load %arg2[%c5, %c0_17, %c0_18] : memref<7x32x64xf32, #tpu.memory_space<vmem>>, vector<1x32x64xf32>
    %25 = vector.shape_cast %24 : vector<1x32x64xf32> to vector<32x64xf32>
    %cst_19 = arith.constant dense<0.000000e+00> : vector<18x64xf32>
    %26 = tpu.matmul %19, %25, %cst_19 {dimension_numbers = #tpu.dot_dimension_numbers<[1], [0], [0], [1], [0, 0, 1, 1], [], []>} : vector<18x32xf32>, vector<32x64xf32>, vector<18x64xf32> -> vector<18x64xf32>
    %27 = arith.addf %18, %26 : vector<18x64xf32>
    %c0_20 = arith.constant 0 : index
    %c0_21 = arith.constant 0 : index
    %c0_22 = arith.constant 0 : index
    %28 = vector.load %arg4[%c0_20, %c0_21, %c0_22] : memref<5x1x64xf32, #tpu.memory_space<vmem>>, vector<1x1x64xf32>
    %29 = vector.shape_cast %28 : vector<1x1x64xf32> to vector<1x64xf32>
    %30 = vector.broadcast %29 : vector<1x64xf32> to vector<18x64xf32>
    %31 = arith.addf %23, %30 : vector<18x64xf32>
    %32 = math.tanh %31 : vector<18x64xf32>
    %c1_23 = arith.constant 1 : index
    %c0_24 = arith.constant 0 : index
    %c0_25 = arith.constant 0 : index
    %33 = vector.load %arg4[%c1_23, %c0_24, %c0_25] : memref<5x1x64xf32, #tpu.memory_space<vmem>>, vector<1x1x64xf32>
    %34 = vector.shape_cast %33 : vector<1x1x64xf32> to vector<1x64xf32>
    %35 = vector.broadcast %34 : vector<1x64xf32> to vector<18x64xf32>
    %36 = arith.addf %27, %35 : vector<18x64xf32>
    %37 = arith.negf %36 : vector<18x64xf32>
    %38 = math.exp %37 : vector<18x64xf32>
    %cst_26 = arith.constant 1.000000e+00 : f32
    %39 = vector.broadcast %cst_26 : f32 to vector<18x64xf32>
    %40 = arith.addf %39, %38 : vector<18x64xf32>
    %41 = arith.divf %39, %40 : vector<18x64xf32>
    %42 = arith.mulf %32, %41 : vector<18x64xf32>
    %43 = vector.extract_strided_slice %42 {offsets = [0, 0], sizes = [16, 64], strides = [1, 1]} : vector<18x64xf32> to vector<16x64xf32>
    %c0_27 = arith.constant 0 : index
    %c0_28 = arith.constant 0 : index
    %c0_29 = arith.constant 0 : index
    %44 = vector.load %arg3[%c0_27, %c0_28, %c0_29] : memref<6x64x64xf32, #tpu.memory_space<vmem>>, vector<1x64x64xf32>
    %45 = vector.shape_cast %44 : vector<1x64x64xf32> to vector<64x64xf32>
    %cst_30 = arith.constant dense<0.000000e+00> : vector<16x64xf32>
    %46 = tpu.matmul %43, %45, %cst_30 {dimension_numbers = #tpu.dot_dimension_numbers<[1], [0], [0], [1], [0, 0, 1, 1], [], []>} : vector<16x64xf32>, vector<64x64xf32>, vector<16x64xf32> -> vector<16x64xf32>
    %47 = vector.extract_strided_slice %42 {offsets = [0, 0], sizes = [16, 64], strides = [1, 1]} : vector<18x64xf32> to vector<16x64xf32>
    %c3_31 = arith.constant 3 : index
    %c0_32 = arith.constant 0 : index
    %c0_33 = arith.constant 0 : index
    %48 = vector.load %arg3[%c3_31, %c0_32, %c0_33] : memref<6x64x64xf32, #tpu.memory_space<vmem>>, vector<1x64x64xf32>
    %49 = vector.shape_cast %48 : vector<1x64x64xf32> to vector<64x64xf32>
    %cst_34 = arith.constant dense<0.000000e+00> : vector<16x64xf32>
    %50 = tpu.matmul %47, %49, %cst_34 {dimension_numbers = #tpu.dot_dimension_numbers<[1], [0], [0], [1], [0, 0, 1, 1], [], []>} : vector<16x64xf32>, vector<64x64xf32>, vector<16x64xf32> -> vector<16x64xf32>
    %51 = vector.extract_strided_slice %42 {offsets = [1, 0], sizes = [16, 64], strides = [1, 1]} : vector<18x64xf32> to vector<16x64xf32>
    %c1_35 = arith.constant 1 : index
    %c0_36 = arith.constant 0 : index
    %c0_37 = arith.constant 0 : index
    %52 = vector.load %arg3[%c1_35, %c0_36, %c0_37] : memref<6x64x64xf32, #tpu.memory_space<vmem>>, vector<1x64x64xf32>
    %53 = vector.shape_cast %52 : vector<1x64x64xf32> to vector<64x64xf32>
    %cst_38 = arith.constant dense<0.000000e+00> : vector<16x64xf32>
    %54 = tpu.matmul %51, %53, %cst_38 {dimension_numbers = #tpu.dot_dimension_numbers<[1], [0], [0], [1], [0, 0, 1, 1], [], []>} : vector<16x64xf32>, vector<64x64xf32>, vector<16x64xf32> -> vector<16x64xf32>
    %55 = arith.addf %46, %54 : vector<16x64xf32>
    %c4_39 = arith.constant 4 : index
    %c0_40 = arith.constant 0 : index
    %c0_41 = arith.constant 0 : index
    %56 = vector.load %arg3[%c4_39, %c0_40, %c0_41] : memref<6x64x64xf32, #tpu.memory_space<vmem>>, vector<1x64x64xf32>
    %57 = vector.shape_cast %56 : vector<1x64x64xf32> to vector<64x64xf32>
    %cst_42 = arith.constant dense<0.000000e+00> : vector<16x64xf32>
    %58 = tpu.matmul %51, %57, %cst_42 {dimension_numbers = #tpu.dot_dimension_numbers<[1], [0], [0], [1], [0, 0, 1, 1], [], []>} : vector<16x64xf32>, vector<64x64xf32>, vector<16x64xf32> -> vector<16x64xf32>
    %59 = arith.addf %50, %58 : vector<16x64xf32>
    %60 = vector.extract_strided_slice %42 {offsets = [2, 0], sizes = [16, 64], strides = [1, 1]} : vector<18x64xf32> to vector<16x64xf32>
    %c2_43 = arith.constant 2 : index
    %c0_44 = arith.constant 0 : index
    %c0_45 = arith.constant 0 : index
    %61 = vector.load %arg3[%c2_43, %c0_44, %c0_45] : memref<6x64x64xf32, #tpu.memory_space<vmem>>, vector<1x64x64xf32>
    %62 = vector.shape_cast %61 : vector<1x64x64xf32> to vector<64x64xf32>
    %cst_46 = arith.constant dense<0.000000e+00> : vector<16x64xf32>
    %63 = tpu.matmul %60, %62, %cst_46 {dimension_numbers = #tpu.dot_dimension_numbers<[1], [0], [0], [1], [0, 0, 1, 1], [], []>} : vector<16x64xf32>, vector<64x64xf32>, vector<16x64xf32> -> vector<16x64xf32>
    %64 = arith.addf %55, %63 : vector<16x64xf32>
    %c5_47 = arith.constant 5 : index
    %c0_48 = arith.constant 0 : index
    %c0_49 = arith.constant 0 : index
    %65 = vector.load %arg3[%c5_47, %c0_48, %c0_49] : memref<6x64x64xf32, #tpu.memory_space<vmem>>, vector<1x64x64xf32>
    %66 = vector.shape_cast %65 : vector<1x64x64xf32> to vector<64x64xf32>
    %cst_50 = arith.constant dense<0.000000e+00> : vector<16x64xf32>
    %67 = tpu.matmul %60, %66, %cst_50 {dimension_numbers = #tpu.dot_dimension_numbers<[1], [0], [0], [1], [0, 0, 1, 1], [], []>} : vector<16x64xf32>, vector<64x64xf32>, vector<16x64xf32> -> vector<16x64xf32>
    %68 = arith.addf %59, %67 : vector<16x64xf32>
    %c2_51 = arith.constant 2 : index
    %c0_52 = arith.constant 0 : index
    %c0_53 = arith.constant 0 : index
    %69 = vector.load %arg4[%c2_51, %c0_52, %c0_53] : memref<5x1x64xf32, #tpu.memory_space<vmem>>, vector<1x1x64xf32>
    %70 = vector.shape_cast %69 : vector<1x1x64xf32> to vector<1x64xf32>
    %71 = vector.broadcast %70 : vector<1x64xf32> to vector<16x64xf32>
    %72 = arith.addf %64, %71 : vector<16x64xf32>
    %73 = math.tanh %72 : vector<16x64xf32>
    %c3_54 = arith.constant 3 : index
    %c0_55 = arith.constant 0 : index
    %c0_56 = arith.constant 0 : index
    %74 = vector.load %arg4[%c3_54, %c0_55, %c0_56] : memref<5x1x64xf32, #tpu.memory_space<vmem>>, vector<1x1x64xf32>
    %75 = vector.shape_cast %74 : vector<1x1x64xf32> to vector<1x64xf32>
    %76 = vector.broadcast %75 : vector<1x64xf32> to vector<16x64xf32>
    %77 = arith.addf %68, %76 : vector<16x64xf32>
    %78 = arith.negf %77 : vector<16x64xf32>
    %79 = math.exp %78 : vector<16x64xf32>
    %cst_57 = arith.constant 1.000000e+00 : f32
    %80 = vector.broadcast %cst_57 : f32 to vector<16x64xf32>
    %81 = arith.addf %80, %79 : vector<16x64xf32>
    %82 = arith.divf %80, %81 : vector<16x64xf32>
    %83 = arith.mulf %73, %82 : vector<16x64xf32>
    %c0_58 = arith.constant 0 : index
    %c0_59 = arith.constant 0 : index
    %84 = vector.load %arg5[%c0_58, %c0_59] : memref<64x16xf32, #tpu.memory_space<vmem>>, vector<64x16xf32>
    %cst_60 = arith.constant dense<0.000000e+00> : vector<16x16xf32>
    %85 = tpu.matmul %83, %84, %cst_60 {dimension_numbers = #tpu.dot_dimension_numbers<[1], [0], [0], [1], [0, 0, 1, 1], [], []>} : vector<16x64xf32>, vector<64x16xf32>, vector<16x16xf32> -> vector<16x16xf32>
    %86 = vector.extract_strided_slice %85 {offsets = [0, 0], sizes = [16, 8], strides = [1, 1]} : vector<16x16xf32> to vector<16x8xf32>
    %c0_61 = arith.constant 0 : index
    %c0_62 = arith.constant 0 : index
    %87 = vector.load %arg6[%c0_61, %c0_62] : memref<8x8xf32, #tpu.memory_space<vmem>>, vector<8x8xf32>
    %cst_63 = arith.constant dense<0.000000e+00> : vector<16x8xf32>
    %88 = tpu.matmul %86, %87, %cst_63 {dimension_numbers = #tpu.dot_dimension_numbers<[1], [0], [0], [1], [0, 0, 1, 1], [], []>} : vector<16x8xf32>, vector<8x8xf32>, vector<16x8xf32> -> vector<16x8xf32>
    %89 = vector.extract_strided_slice %85 {offsets = [0, 8], sizes = [16, 8], strides = [1, 1]} : vector<16x16xf32> to vector<16x8xf32>
    %cst_64 = arith.constant dense<0.000000e+00> : vector<16x16xf32>
    %90 = tpu.matmul %88, %89, %cst_64 {dimension_numbers = #tpu.dot_dimension_numbers<[1], [1], [0], [0], [0, 0, 1, 0], [], []>} : vector<16x8xf32>, vector<16x8xf32>, vector<16x16xf32> -> vector<16x16xf32>
    %c1_65 = arith.constant 1 : index
    %c0_66 = arith.constant 0 : index
    %c0_67 = arith.constant 0 : index
    %91 = vector.load %arg7[%c1_65, %c0_66, %c0_67] : memref<2x16x16xf32, #tpu.memory_space<vmem>>, vector<1x16x16xf32>
    %92 = vector.shape_cast %91 : vector<1x16x16xf32> to vector<16x16xf32>
    %c0_68 = arith.constant 0 : index
    %c0_69 = arith.constant 0 : index
    %c0_70 = arith.constant 0 : index
    %93 = vector.load %arg7[%c0_68, %c0_69, %c0_70] : memref<2x16x16xf32, #tpu.memory_space<vmem>>, vector<1x16x16xf32>
    %94 = vector.shape_cast %93 : vector<1x16x16xf32> to vector<16x16xf32>
    %95 = arith.addf %90, %94 : vector<16x16xf32>
    %96 = arith.negf %95 : vector<16x16xf32>
    %97 = math.exp %96 : vector<16x16xf32>
    %cst_71 = arith.constant 1.000000e+00 : f32
    %98 = vector.broadcast %cst_71 : f32 to vector<16x16xf32>
    %99 = arith.addf %98, %97 : vector<16x16xf32>
    %100 = arith.divf %98, %99 : vector<16x16xf32>
    %cst_72 = arith.constant dense<0.000000e+00> : vector<16x16xf32>
    %101 = tpu.matmul %92, %100, %cst_72 {dimension_numbers = #tpu.dot_dimension_numbers<[1], [0], [0], [1], [0, 0, 1, 1], [], []>} : vector<16x16xf32>, vector<16x16xf32>, vector<16x16xf32> -> vector<16x16xf32>
    %cst_73 = arith.constant dense<0xFF800000> : vector<16xf32>
    %102 = vector.multi_reduction <maximumf>, %101, %cst_73 [1] : vector<16x16xf32> to vector<16xf32>
    %103 = vector.shape_cast %102 : vector<16xf32> to vector<16x1xf32>
    %104 = vector.broadcast %103 : vector<16x1xf32> to vector<16x16xf32>
    %105 = arith.subf %101, %104 : vector<16x16xf32>
    %106 = math.exp %105 : vector<16x16xf32>
    %cst_74 = arith.constant dense<0.000000e+00> : vector<16xf32>
    %107 = vector.multi_reduction <add>, %106, %cst_74 [1] : vector<16x16xf32> to vector<16xf32>
    %108 = vector.shape_cast %107 : vector<16xf32> to vector<16x1xf32>
    %109 = tpu.reciprocal %108 {approx = true} : vector<16x1xf32> -> vector<16x1xf32>
    %110 = vector.broadcast %109 : vector<16x1xf32> to vector<16x16xf32>
    %111 = arith.mulf %106, %110 : vector<16x16xf32>
    %112 = vector.extract_strided_slice %1 {offsets = [6, 0], sizes = [16, 32], strides = [1, 1]} : vector<22x32xf32> to vector<16x32xf32>
    %c6 = arith.constant 6 : index
    %c0_75 = arith.constant 0 : index
    %c0_76 = arith.constant 0 : index
    %113 = vector.load %arg2[%c6, %c0_75, %c0_76] : memref<7x32x64xf32, #tpu.memory_space<vmem>>, vector<1x32x64xf32>
    %114 = vector.shape_cast %113 : vector<1x32x64xf32> to vector<32x64xf32>
    %cst_77 = arith.constant dense<0.000000e+00> : vector<16x64xf32>
    %115 = tpu.matmul %112, %114, %cst_77 {dimension_numbers = #tpu.dot_dimension_numbers<[1], [0], [0], [1], [0, 0, 1, 1], [], []>} : vector<16x32xf32>, vector<32x64xf32>, vector<16x64xf32> -> vector<16x64xf32>
    %c4_78 = arith.constant 4 : index
    %c0_79 = arith.constant 0 : index
    %c0_80 = arith.constant 0 : index
    %116 = vector.load %arg4[%c4_78, %c0_79, %c0_80] : memref<5x1x64xf32, #tpu.memory_space<vmem>>, vector<1x1x64xf32>
    %117 = vector.shape_cast %116 : vector<1x1x64xf32> to vector<1x64xf32>
    %118 = vector.broadcast %117 : vector<1x64xf32> to vector<16x64xf32>
    %119 = arith.addf %115, %118 : vector<16x64xf32>
    %cst_81 = arith.constant dense<0.000000e+00> : vector<16x64xf32>
    %120 = tpu.matmul %111, %83, %cst_81 {dimension_numbers = #tpu.dot_dimension_numbers<[1], [0], [0], [1], [0, 0, 1, 1], [], []>} : vector<16x16xf32>, vector<16x64xf32>, vector<16x64xf32> -> vector<16x64xf32>
    %121 = arith.addf %120, %119 : vector<16x64xf32>
    %cst_82 = arith.constant 0.999994993 : f32
    %122 = vector.broadcast %cst_82 : f32 to vector<16x64xf32>
    %123 = arith.mulf %121, %122 : vector<16x64xf32>
    %c0_83 = arith.constant 0 : index
    %c0_84 = arith.constant 0 : index
    %c0_85 = arith.constant 0 : index
    %124 = vector.load %arg8[%c0_83, %c0_84, %c0_85] : memref<1x16x64xf32, #tpu.memory_space<vmem>>, vector<1x16x64xf32>
    %125 = vector.shape_cast %124 : vector<1x16x64xf32> to vector<16x64xf32>
    %126 = vector.shape_cast %123 : vector<16x64xf32> to vector<1x16x64xf32>
    tpu.vector_store %arg8[%c0_83, %c0_84, %c0_85], %126 {strides = array<i32>} : memref<1x16x64xf32, #tpu.memory_space<vmem>>, vector<1x16x64xf32>,
    return
  }
  func.func @transform_0(%arg0: i32) -> (i32, i32, i32) {
    %c0_i32 = arith.constant 0 : i32
    %c0_i32_0 = arith.constant 0 : i32
    %c0_i32_1 = arith.constant 0 : i32
    return %arg0, %c0_i32, %c0_i32_0 : i32, i32, i32
  }
  func.func @transform_1(%arg0: i32) -> (i32, i32, i32) {
    %c0_i32 = arith.constant 0 : i32
    %c0_i32_0 = arith.constant 0 : i32
    %c0_i32_1 = arith.constant 0 : i32
    %c0_i32_2 = arith.constant 0 : i32
    return %c0_i32, %c0_i32_0, %c0_i32_1 : i32, i32, i32
  }
  func.func @transform_2(%arg0: i32) -> (i32, i32, i32) {
    %c0_i32 = arith.constant 0 : i32
    %c0_i32_0 = arith.constant 0 : i32
    %c0_i32_1 = arith.constant 0 : i32
    %c0_i32_2 = arith.constant 0 : i32
    return %c0_i32, %c0_i32_0, %c0_i32_1 : i32, i32, i32
  }
  func.func @transform_3(%arg0: i32) -> (i32, i32, i32) {
    %c0_i32 = arith.constant 0 : i32
    %c0_i32_0 = arith.constant 0 : i32
    %c0_i32_1 = arith.constant 0 : i32
    %c0_i32_2 = arith.constant 0 : i32
    return %c0_i32, %c0_i32_0, %c0_i32_1 : i32, i32, i32
  }
  func.func @transform_4(%arg0: i32) -> (i32, i32) {
    %c0_i32 = arith.constant 0 : i32
    %c0_i32_0 = arith.constant 0 : i32
    %c0_i32_1 = arith.constant 0 : i32
    return %c0_i32, %c0_i32_0 : i32, i32
  }
  func.func @transform_5(%arg0: i32) -> (i32, i32) {
    %c0_i32 = arith.constant 0 : i32
    %c0_i32_0 = arith.constant 0 : i32
    %c0_i32_1 = arith.constant 0 : i32
    return %c0_i32, %c0_i32_0 : i32, i32
  }
  func.func @transform_6(%arg0: i32) -> (i32, i32, i32) {
    %c0_i32 = arith.constant 0 : i32
    %c0_i32_0 = arith.constant 0 : i32
    %c0_i32_1 = arith.constant 0 : i32
    %c0_i32_2 = arith.constant 0 : i32
    return %c0_i32, %c0_i32_0, %c0_i32_1 : i32, i32, i32
  }
  func.func @transform_7(%arg0: i32) -> (i32, i32, i32) {
    %c0_i32 = arith.constant 0 : i32
    %c0_i32_0 = arith.constant 0 : i32
    %c0_i32_1 = arith.constant 0 : i32
    return %arg0, %c0_i32, %c0_i32_0 : i32, i32, i32
  }
}

</mosaic_0001>

<bundles_post_ra>
// kernel: tile.27
= control target key start
LH: loop header
LB: loop body
LE: loop exit
PB: predicated region body
PF: predicated region fallthrough
CT: control target
= control target key end

     0   :  { %s22_s0 = inlined_call_operand.vmem [shape: f32[8], index: 0, kind: input, shape index: {}]   ;;  %s23_s1 = inlined_call_operand.vmem [shape: f32[8,8], index: 1, kind: output, shape index: {}]  }
   0x1   :  { %v4_v0 = vld [vmem:[%s22_s0] ss:$0 sm:$0xff] }
   0x2   :  { %5 = vst [vmem:[%s23_s1] sm:$0xff] %v4_v0 }

// kernel: tile.43
= control target key start
LH: loop header
LB: loop body
LE: loop exit
PB: predicated region body
PF: predicated region fallthrough
CT: control target
= control target key end

     0   :  { %s67_s10 = smov 56   ;;  %s68_s11 = smov 40   ;;  %vm3_vm0 = vcmask 64512   ;;  %vm9_vm1 = vcmask 523712   ;;  %vm15_vm2 = vcmask 458112   ;;  %vm21_vm3 = vcmask 392512   ;;  %s111_s0 = inlined_call_operand.vmem [shape: f32[8,8], index: 0, kind: input, shape index: {}]   ;;  %s112_s1 = inlined_call_operand.vmem [shape: f32[1,64], index: 1, kind: output, shape index: {}]  }
   0x1   :  { %v53_v0 = vld [vmem:[%s111_s0 + $0x7] sm:$0x1]   ;;  %v55_v1 = vld [vmem:[%s111_s0 + $0x5] sm:$0x1]   ;;  %v57_v2 = vld [vmem:[%s111_s0 + $0x3] sm:$0x1]  }
   0x2   :  { %7 = vrot.lane.b32.xlu0 %v53_v0, %s67_s10  ;;  %19 = vrot.lane.b32.xlu1 %v55_v1, %s68_s11  ;;  %s69_s14 = smov 24   ;;  %v54_v3 = vld [vmem:[%s111_s0 + $0x6] sm:$0x1]   ;;  %v56_v4 = vld [vmem:[%s111_s0 + $0x4] sm:$0x1]   ;;  %s70_s21 = smov 48  }
   0x3   :  { %31 = vrot.lane.b32.xlu2 %v57_v2, %s69_s14  ;;  %v58_v5 = vld [vmem:[%s111_s0 + $0x2] sm:$0x1]   ;;  %s71_s22 = smov 32   ;;  %s72_s23 = smov 16   ;;  %v59_v6 = vld [vmem:[%s111_s0 + $0x1] sm:$0x1]  }
   0x4   :  { %s73_s26 = smov 8   ;;  %v2_v7 = vld [vmem:[%s111_s0] sm:$0x1]   ;;  %vm27_vm4 = vcmask 326912   ;;  %vm33_vm5 = vcmask 261312   ;;  %vm39_vm6 = vcmask 195712  }
   0x5   :  { %4 = vst.msk [vmem:[#allocation0] sm:$0x1] %vm3_vm0, %v2_v7   ;;  %vm45_vm7 = vcmask 130112  }
   0xa   :  { %13 = vrot.lane.b32.xlu0 %v54_v3, %s70_s21  ;;  %25 = vrot.lane.b32.xlu1 %v56_v4, %s71_s22 }
   0xb   :  { %37 = vrot.lane.b32.xlu2 %v58_v5, %s72_s23 }
  0x12   :  { %43 = vrot.lane.b32.xlu0 %v59_v6, %s73_s26 }
  0x5d   :  { %v32_v8 = vpop.permute.xlu2 %31  }
  0x65   :  { %v38_v9 = vpop.permute.xlu2 %37  }
  0x74   :  { %v8_v10 = vpop.permute.xlu0 %7   ;;  %v20_v11 = vpop.permute.xlu1 %19  }
  0x75   :  { %10 = vst.msk [vmem:[#allocation0] sm:$0x1] %vm9_vm1, %v8_v10  }
  0x7c   :  { %v14_v12 = vpop.permute.xlu0 %13   ;;  %v26_v13 = vpop.permute.xlu1 %25  }
  0x7d   :  { %16 = vst.msk [vmem:[#allocation0] sm:$0x1] %vm15_vm2, %v14_v12  }
  0x7e   :  { %22 = vst.msk [vmem:[#allocation0] sm:$0x1] %vm21_vm3, %v20_v11  }
  0x7f   :  { %28 = vst.msk [vmem:[#allocation0] sm:$0x1] %vm27_vm4, %v26_v13  }
  0x80   :  { %34 = vst.msk [vmem:[#allocation0] sm:$0x1] %vm33_vm5, %v32_v8  }
  0x81   :  { %40 = vst.msk [vmem:[#allocation0] sm:$0x1] %vm39_vm6, %v38_v9  }
  0x84   :  { %v44_v14 = vpop.permute.xlu0 %43  }
  0x85   :  { %46 = vst.msk [vmem:[#allocation0] sm:$0x1] %vm45_vm7, %v44_v14  }
  0x8c   :  { %v49_v15 = vld [vmem:[#allocation0] sm:$0x1] }
  0x8d   :  { %52 = vst [vmem:[%s112_s1] sm:$0x1] %v49_v15 }

// kernel: gcnpool_forward.1
= control target key start
LH: loop header
LB: loop body
LE: loop exit
PB: predicated region body
PF: predicated region fallthrough
CT: control target
= control target key end

     0   :  { %s1436_s24 = smov 0   ;;  %s1840_s0 = inlined_call_operand.vmem [shape: f32[2,22,32], index: 0, kind: input, shape index: {}]   ;;  %s1841_s1 = inlined_call_operand.vmem [shape: f32[7,32,64], index: 1, kind: input, shape index: {}]   ;;  %s1842_s2 = inlined_call_operand.vmem [shape: f32[6,64,64], index: 2, kind: input, shape index: {}]   ;;  %s1843_s3 = inlined_call_operand.vmem [shape: f32[5,1,64], index: 3, kind: input, shape index: {}]   ;;  %s1844_s4 = inlined_call_operand.vmem [shape: f32[64,16], index: 4, kind: input, shape index: {}]   ;;  %s1845_s5 = inlined_call_operand.vmem [shape: f32[8,8], index: 5, kind: input, shape index: {}]   ;;  %s1846_s6 = inlined_call_operand.vmem [shape: f32[2,16,16], index: 6, kind: input, shape index: {}]   ;;  %s1847_s7 = inlined_call_operand.vmem [shape: f32[2,16,64], index: 7, kind: output, shape index: {}]  }
   0x1 LB: > { %s1194_s25 = sadd.s32 4294967295, %s1393_s24   ;;  %p1198_p0 = scmp.ge.s32.totalorder %s1393_s24, 1  ;;  %s1393_s24 = sphi %s1436_s24, %s17_s24  }
   0x2   : > { %p237_p1 = scmp.lt.s32.totalorder %s1393_s24, 3 }
   0x4   : > { %p238_p2 = pnand %p1198_p0, %p237_p1 }
   0x5   : > { %p269_p3 = scmp.lt.s32.totalorder (!%p238_p2), %s1194_s25, 1  ;;  %s1395_s9 = smov (!%p238_p2), 120  }
   0x6   : > { %241 = sbr.rel (%p238_p2) target bundleno = 1356 (0x54c), region = 48 }
   0xb   : > { %v285_v0 = vld [vmem:[%s1841_s1 + $0x18] sm:$0xff]  ;;  %v284_v1 = vld [vmem:[%s1841_s1 + $0x10] sm:$0xff]  ;;  %v283_v4 = vld [vmem:[%s1841_s1 + $0x8] sm:$0xff]  ;;  %s1849_s25 = smov (!%p269_p3, %s1194_s25), 1  ;;  %vm305_vm0 = vcmask 261120   ;;  %vm299_vm1 = vcmask 1045504  }
   0xc   : > { %v1209_v2 = vld [vmem:[%s1841_s1 + $0x38] sm:$0xff]  ;;  %356 = vmatpush.msra.mxu1 %v285_v0  ;;  %v1208_v3 = vld [vmem:[%s1841_s1 + $0x30] sm:$0xff]  ;;  %v1207_v5 = vld [vmem:[%s1841_s1 + $0x28] sm:$0xff]  ;;  %s1326_s27 = smul.u32 24, %s1849_s25  ;;  %vm432_vm2 = vcmask 1043456   ;;  %vm620_vm7 = vcmask 523264  }
   0xd   : > { %324 = vmatpush.msra.mxu0 %v1209_v2  ;;  %v1219_v6 = vld [vmem:[%s1841_s1 + $0x98] sm:$0xff]  ;;  %v1218_v8 = vld [vmem:[%s1841_s1 + $0x90] sm:$0xff]  ;;  %v282_v10 = vld [vmem:[%s1841_s1] sm:$0xff]  ;;  %vm614_vm12 = vcmask 1046528   ;;  %s1325_s30 = sshll.u32 %s1849_s25, 4 }
   0xe   : > { %357 = vmatpush.msra.mxu1 %v284_v1  ;;  %v1205_v7 = vld [vmem:[%s1841_s1 + $0x78] sm:$0xff]  ;;  %v1204_v9 = vld [vmem:[%s1841_s1 + $0x70] sm:$0xff]  ;;  %v1206_v11 = vld [vmem:[%s1841_s1 + $0x20] sm:$0xff]  ;;  %387 = vmatpush.msra.mxu2 %v1219_v6  ;;  %s273_s11 = scalar_lea.vmem %s1840_s0, %s1326_s27  ;;  %s278_s10 = scalar_lea.vmem %s1847_s7, %s1325_s30 }
   0xf   : > { %325 = vmatpush.msra.mxu0 %v1208_v3  ;;  %413 = vmatpush.msra.mxu3 %v1205_v7  ;;  %v1217_v12 = vld [vmem:[%s1841_s1 + $0x88] sm:$0xff]  ;;  %v1236_v14 = vld [vmem:[%s1841_s1 + $0xb8] sm:$0xff]  ;;  %v1216_v15 = vld [vmem:[%s1841_s1 + $0x80] sm:$0xff] }
  0x10   : > { %358 = vmatpush.msra.mxu1 %v283_v4  ;;  %388 = vmatpush.msra.mxu2 %v1218_v8  ;;  %v1203_v13 = vld [vmem:[%s1841_s1 + $0x68] sm:$0xff]  ;;  %v1498_v16 = vld [vmem:[%s273_s11] sm:$0xff]  ;;  %v1229_v18 = vld [vmem:[%s1841_s1 + $0x58] sm:$0xff] }
  0x11   : > { %326 = vmatpush.msra.mxu0 %v1207_v5  ;;  %414 = vmatpush.msra.mxu3 %v1204_v9  ;;  %v1500_v17 = vld [vmem:[%s273_s11 + $0x8] sm:$0xff]  ;;  %v300_v19 = vrot.slane %v1498_v16, 2  ;;  %v1202_v21 = vld [vmem:[%s1841_s1 + $0x60] sm:$0xff]  ;;  %v1235_v22 = vld [vmem:[%s1841_s1 + $0xb0] sm:$0xff]  ;;  %v433_v32 = vrot.slane %v1498_v16, 4 }
  0x12   : > { %359 = vmatpush.msra.mxu1 %v282_v10  ;;  %v301_v20 = vrot.slane %v1500_v17, 2  ;;  %389 = vmatpush.msra.mxu2 %v1217_v12  ;;  %v1515_v23 = vld [vmem:[%s273_s11 + $0x10] sm:$0x3f]  ;;  %v1234_v27 = vld [vmem:[%s1841_s1 + $0xa8] sm:$0xff]  ;;  %v1233_v29 = vld [vmem:[%s1841_s1 + $0xa0] sm:$0xff]  ;;  %v434_v33 = vrot.slane %v1500_v17, 4 }
  0x13   : > { %327 = vmatpush.msra.mxu0 %v1206_v11  ;;  %1213 = vmatmul.msk.f32.vlgmr.msra.gmra.mxu1 %vm305_vm0, %v1498_v16  ;;  %v1228_v24 = vld [vmem:[%s1841_s1 + $0x50] sm:$0xff]  ;;  %v303_v26 = vrot.slane %v1515_v23, 2  ;;  %v1227_v28 = vld [vmem:[%s1841_s1 + $0x48] sm:$0xff]  ;;  %v1226_v30 = vld [vmem:[%s1841_s1 + $0x40] sm:$0xff]  ;;  %v436_v35 = vrot.slane %v1515_v23, 4 }
  0x14   : > { %415 = vmatpush.msra.mxu3 %v1203_v13  ;;  %490 = vmatpush.msrb.mxu1 %v1236_v14  ;;  %v302_v25 = vsel %vm299_vm1, %v300_v19, %v301_v20  ;;  %v435_v34 = vsel %vm432_vm2, %v433_v32, %v434_v33  ;;  %v592_v40 = vld [vmem:[%s1842_s2 + $0x38] sm:$0xff]  ;;  %v591_v44 = vld [vmem:[%s1842_s2 + $0x30] sm:$0xff]  ;;  %v590_v46 = vld [vmem:[%s1842_s2 + $0x28] sm:$0xff] }
  0x15   : > { %390 = vmatpush.msra.mxu2 %v1216_v15  ;;  %456 = vmatpush.msrb.mxu0 %v1229_v18  ;;  %v304_v31 = vsel %vm299_vm1, %v301_v20, %v303_v26  ;;  %v437_v36 = vsel %vm432_vm2, %v434_v33, %v436_v35  ;;  %v589_v47 = vld [vmem:[%s1842_s2 + $0x20] sm:$0xff]  ;;  %v588_v48 = vld [vmem:[%s1842_s2 + $0x18] sm:$0xff]  ;;  %v587_v51 = vld [vmem:[%s1842_s2 + $0x10] sm:$0xff] }
  0x16   : > { %1210 = vmatmul.msk.f32.vlgmr.msra.gmra.mxu0 %vm305_vm0, %v302_v25  ;;  %416 = vmatpush.msra.mxu3 %v1202_v21  ;;  %v1588_v50 = vld [vmem:[%s1843_s3 + $0x1] ss:$0 sm:$0xff]  ;;  %v1259_v54 = vld [vmem:[%s1842_s2 + $0x78] sm:$0xff]  ;;  %v586_v59 = vld [vmem:[%s1842_s2 + $0x8] sm:$0xff] }
  0x17   : > { %1220 = vmatmul.msk.f32.vlgmr.msra.gmra.mxu2 %vm305_vm0, %v302_v25  ;;  %1223 = vmatmul.msk.f32.vlgmr.msra.gmra.mxu3 %vm305_vm0, %v1498_v16  ;;  %v1283_v55 = vld [vmem:[%s1842_s2 + $0xb8] sm:$0xff]  ;;  %v1258_v61 = vld [vmem:[%s1842_s2 + $0x70] sm:$0xff]  ;;  %v585_v0 = vld [vmem:[%s1842_s2] sm:$0xff] }
  0x18   : > { %491 = vmatpush.msrb.mxu1 %v1235_v22  ;;  %457 = vmatpush.msrb.mxu0 %v1228_v24  ;;  %v1293_v56 = vld [vmem:[%s1842_s2 + $0x178] sm:$0xff]  ;;  %v1282_v62 = vld [vmem:[%s1842_s2 + $0xb0] sm:$0xff]  ;;  %v1257_v2 = vld [vmem:[%s1842_s2 + $0x68] sm:$0xff] }
  0x19   : > { %660 = vmatpush.msrb.mxu3 %v592_v40  ;;  %633 = vmatpush.msrb.mxu2 %v1259_v54  ;;  %v1292_v63 = vld [vmem:[%s1842_s2 + $0x170] sm:$0xff]  ;;  %v1281_v3 = vld [vmem:[%s1842_s2 + $0xa8] sm:$0xff]  ;;  %v1251_v5 = vld [vmem:[%s1842_s2 + $0xf8] sm:$0xff] }
  0x1a   : > { %492 = vmatpush.msrb.mxu1 %v1234_v27  ;;  %458 = vmatpush.msrb.mxu0 %v1227_v28  ;;  %v1291_v4 = vld [vmem:[%s1842_s2 + $0x168] sm:$0xff]  ;;  %v1256_v8 = vld [vmem:[%s1842_s2 + $0x60] sm:$0xff]  ;;  %v1250_v11 = vld [vmem:[%s1842_s2 + $0xf0] sm:$0xff] }
  0x1b   : > { %1214 = vmatmul.msk.f32.gmra.mxu1 %vm305_vm0, %v1500_v17  ;;  %661 = vmatpush.msrb.mxu3 %v591_v44  ;;  %v1280_v9 = vld [vmem:[%s1842_s2 + $0xa0] sm:$0xff]  ;;  %v1255_v12 = vld [vmem:[%s1842_s2 + $0x58] sm:$0xff]  ;;  %v1249_v18 = vld [vmem:[%s1842_s2 + $0xe8] sm:$0xff] }
  0x1c   : > { %493 = vmatpush.msrb.mxu1 %v1233_v29  ;;  %459 = vmatpush.msrb.mxu0 %v1226_v30  ;;  %v1290_v10 = vld [vmem:[%s1842_s2 + $0x160] sm:$0xff]  ;;  %v1279_v13 = vld [vmem:[%s1842_s2 + $0x98] sm:$0xff]  ;;  %v1254_v21 = vld [vmem:[%s1842_s2 + $0x50] sm:$0xff] }
  0x1d   : > { %662 = vmatpush.msrb.mxu3 %v590_v46  ;;  %634 = vmatpush.msrb.mxu2 %v1258_v61  ;;  %v1289_v14 = vld [vmem:[%s1842_s2 + $0x158] sm:$0xff]  ;;  %v1278_v22 = vld [vmem:[%s1842_s2 + $0x90] sm:$0xff]  ;;  %v1248_v27 = vld [vmem:[%s1842_s2 + $0xe0] sm:$0xff] }
  0x1e   : > { %1211 = vmatmul.msk.f32.gmra.mxu0 %vm305_vm0, %v304_v31  ;;  %790 = vmatpush.msra.mxu1 %v1293_v56  ;;  %v1288_v24 = vld [vmem:[%s1842_s2 + $0x150] sm:$0xff]  ;;  %v1253_v28 = vld [vmem:[%s1842_s2 + $0x48] sm:$0xff]  ;;  %v1247_v32 = vld [vmem:[%s1842_s2 + $0xd8] sm:$0xff] }
  0x1f   : > { %1221 = vmatmul.msk.f32.gmra.mxu2 %vm305_vm0, %v304_v31  ;;  %1224 = vmatmul.msk.f32.gmra.mxu3 %vm305_vm0, %v1500_v17  ;;  %v1277_v30 = vld [vmem:[%s1842_s2 + $0x88] sm:$0xff]  ;;  %v1252_v33 = vld [vmem:[%s1842_s2 + $0x40] sm:$0xff]  ;;  %v1246_v44 = vld [vmem:[%s1842_s2 + $0xd0] sm:$0xff] }
  0x20   : > { %663 = vmatpush.msrb.mxu3 %v589_v47  ;;  %756 = vmatpush.msra.mxu0 %v1283_v55  ;;  %v1287_v31 = vld [vmem:[%s1842_s2 + $0x148] sm:$0xff]  ;;  %v1271_v46 = vld [vmem:[%s1842_s2 + $0x138] sm:$0xff]  ;;  %v1337_v56 = vld [vmem:[%s1843_s3] ss:$0 sm:$0xff] }
  0x21   : > { %791 = vmatpush.msra.mxu1 %v1292_v63  ;;  %635 = vmatpush.msrb.mxu2 %v1257_v2  ;;  %v1245_v47 = vld [vmem:[%s1842_s2 + $0xc8] sm:$0xff] }
  0x22   : > { %664 = vmatpush.msrb.mxu3 %v588_v48  ;;  %757 = vmatpush.msra.mxu0 %v1282_v62  ;;  %v1270_v48 = vld [vmem:[%s1842_s2 + $0x130] sm:$0xff]  ;;  %v1269_v54 = vld [vmem:[%s1842_s2 + $0x128] sm:$0xff] }
  0x23   : > { %1215 = vmatmul.msk.f32.gmra.mxu1 %vm305_vm0, %v1515_v23  ;;  %636 = vmatpush.msrb.mxu2 %v1256_v8 }
  0x24   : > { %665 = vmatpush.msrb.mxu3 %v587_v51  ;;  %758 = vmatpush.msra.mxu0 %v1281_v3 }
  0x25   : > { %792 = vmatpush.msra.mxu1 %v1291_v4  ;;  %637 = vmatpush.msrb.mxu2 %v1255_v12  ;;  %v1265_v4 = vld [vmem:[%s1842_s2 + $0x108] sm:$0xff] }
  0x26   : > { %1212 = vmatmul.msk.f32.gmra.mxu0 %vm305_vm0, %v303_v26  ;;  %666 = vmatpush.msrb.mxu3 %v586_v59 }
  0x27   : > { %1222 = vmatmul.msk.f32.gmra.mxu2 %vm305_vm0, %v303_v26  ;;  %1225 = vmatmul.msk.f32.gmra.mxu3 %vm305_vm0, %v1515_v23 }
  0x28   : > { %667 = vmatpush.msrb.mxu3 %v585_v0  ;;  %759 = vmatpush.msra.mxu0 %v1280_v9 }
  0x29   : > { %793 = vmatpush.msra.mxu1 %v1290_v10  ;;  %638 = vmatpush.msrb.mxu2 %v1254_v21 }
  0x2a   : > { %715 = vmatpush.msra.mxu3 %v1251_v5  ;;  %760 = vmatpush.msra.mxu0 %v1279_v13 }
  0x2b   : > { %1237 = vmatmul.msk.f32.vlgmr.msrb.gmra.mxu1 %vm305_vm0, %v435_v34  ;;  %639 = vmatpush.msrb.mxu2 %v1253_v28 }
  0x2c   : > { %716 = vmatpush.msra.mxu3 %v1250_v11  ;;  %794 = vmatpush.msra.mxu1 %v1289_v14 }
  0x2d   : > { %761 = vmatpush.msra.mxu0 %v1278_v22  ;;  %640 = vmatpush.msrb.mxu2 %v1252_v33 }
  0x2e   : > { %1230 = vmatmul.msk.f32.vlgmr.msrb.gmra.mxu0 %vm305_vm0, %v435_v34  ;;  %717 = vmatpush.msra.mxu3 %v1249_v18  ;;  %v1276_v34 = vld [vmem:[%s1842_s2 + $0x80] sm:$0xff] }
  0x2f   : > { %795 = vmatpush.msra.mxu1 %v1288_v24  ;;  %762 = vmatpush.msra.mxu0 %v1277_v30 }
  0x30   : > { %718 = vmatpush.msra.mxu3 %v1248_v27  ;;  %692 = vmatpush.msra.mxu2 %v1271_v46 }
  0x31   : > { %796 = vmatpush.msra.mxu1 %v1287_v31  ;;  %763 = vmatpush.msra.mxu0 %v1276_v34 }
  0x32   : > { %719 = vmatpush.msra.mxu3 %v1247_v32  ;;  %693 = vmatpush.msra.mxu2 %v1270_v48 }
  0x33   : > { %1238 = vmatmul.msk.f32.gmra.mxu1 %vm305_vm0, %v437_v36 }
  0x34   : > { %720 = vmatpush.msra.mxu3 %v1246_v44  ;;  %694 = vmatpush.msra.mxu2 %v1269_v54 }
  0x36   : > { %1231 = vmatmul.msk.f32.gmra.mxu0 %vm305_vm0, %v437_v36  ;;  %721 = vmatpush.msra.mxu3 %v1245_v47 }
  0x3b   : > { %1239 = vmatmul.msk.f32.gmra.mxu1 %vm305_vm0, %v436_v35 }
  0x3e   : > { %1232 = vmatmul.msk.f32.gmra.mxu0 %vm305_vm0, %v436_v35  ;;  %v1286_v35 = vld [vmem:[%s1842_s2 + $0x140] sm:$0xff] }
  0x3f   : > { %797 = vmatpush.msra.mxu1 %v1286_v35 }
  0x90   : > { %v1560_v37 = vpop.f32.mrf.mxu1 }
  0x93   : > { %v1562_v38 = vpop.f32.mrf.mxu0 }
  0x98   : > { %v1564_v39 = vpop.f32.mrf.mxu1 }
  0x9a   : > { %v392_v41 = vpop.f32.mrf.mxu2  ;;  %v418_v42 = vpop.f32.mrf.mxu3 }
  0x9b   : > { %v1569_v43 = vpop.f32.mrf.mxu0  ;;  %v419_v49 = vadd.f32 %v418_v42, %v392_v41 }
  0x9c   : > { %v365_v2 = vadd.f32 %v1564_v39, %v1569_v43  ;;  %v1264_v39 = vld [vmem:[%s1842_s2 + $0x100] sm:$0xff] }
  0xa0   : > { %v1574_v45 = vpop.f32.mrf.mxu1 }
  0xa2   : > { %v395_v52 = vpop.f32.mrf.mxu2  ;;  %v421_v53 = vpop.f32.mrf.mxu3 }
  0xa3   : > { %v1602_v57 = vpop.f32.mrf.mxu0  ;;  %v422_v7 = vadd.f32 %v421_v53, %v395_v52  ;;  %v1244_v52 = vld [vmem:[%s1842_s2 + $0xc0] sm:$0xff] }
  0xa4   : > { %722 = vmatpush.msra.mxu3 %v1244_v52 }
  0xa8   : > { %v495_v58 = vpop.f32.mrf.mxu1 }
  0xa9   : > { %v504_v60 = vadd.f32 %v495_v58, %v419_v49  ;;  %v362_v49 = vadd.f32 %v1560_v37, %v1562_v38  ;;  %v1268_v38 = vld [vmem:[%s1842_s2 + $0x120] sm:$0xff] }
  0xaa   : > { %v398_v20 = vpop.f32.mrf.mxu2  ;;  %v424_v26 = vpop.f32.mrf.mxu3  ;;  %695 = vmatpush.msra.mxu2 %v1268_v38 }
  0xab   : > { %v522_v1 = vadd.f32 %v1588_v50, %v504_v60  ;;  %v461_v25 = vpop.f32.mrf.mxu0  ;;  %v425_v41 = vadd.f32 %v424_v26, %v398_v20 }
  0xac   : > { %v470_v55 = vadd.f32 %v461_v25, %v362_v49 }
  0xad   : > { %v1241_v6 = vmul.f32 -1.442695, %v522_v1  ;;  %v1266_v1 = vld [vmem:[%s1842_s2 + $0x110] sm:$0xff] }
  0xae   : > { %v511_v62 = vadd.f32 %v1337_v56, %v470_v55 }
  0xaf   : > { %1341 = vpow2.f32 %v1241_v6 }
  0xb0   : > { %v498_v15 = vpop.f32.mrf.mxu1 }
  0xb1   : > { %v505_v19 = vadd.f32 %v498_v15, %v422_v7  ;;  %v368_v15 = vadd.f32 %v1574_v45, %v1602_v57 }
  0xb3   : > { %v523_v29 = vadd.f32 %v1588_v50, %v505_v19  ;;  %v464_v58 = vpop.f32.mrf.mxu0 }
  0xb4   : > { %v471_v5 = vadd.f32 %v464_v58, %v365_v2  ;;  %v868_v2 = vld [vmem:[%s1844_s4 + $0x28] sm:$0xff] }
  0xb5   : > { %v1342_v36 = vpop.eup %1341  ;;  %v1242_v40 = vmul.f32 -1.442695, %v523_v29 }
  0xb6   : > { %v1690_v42 = vadd.f32 1.0, %v1342_v36  ;;  %v512_v11 = vadd.f32 %v1337_v56, %v471_v5 }
  0xb7   : > { %1343 = vpow2.f32 %v1242_v40 }
  0xb8   : > { %1345 = vrcp.f32 %v1690_v42  ;;  %v501_v51 = vpop.f32.mrf.mxu1  ;;  %v548_v6 = vand.u32 2147483648, %v1690_v42  ;;  %v546_v8 = vand.u32 2147483647, %v1690_v42  ;;  %vm542_vm4 = vweird.f32 %v1690_v42 }
  0xb9   : > { %v506_v53 = vadd.f32 %v501_v51, %v425_v41 }
  0xba   : > { %v549_v14 = vor.u32 1.1754944e-38, %v548_v6  ;;  %vm547_vm6 = vcmp.eq.f32.partialorder %v546_v8, 8.507059e+37  ;;  %v865_v6 = vld [vmem:[%s1844_s4 + $0x10] sm:$0xff] }
  0xbb   : > { %v524_v37 = vadd.f32 %v1588_v50, %v506_v53  ;;  %v1267_v50 = vld [vmem:[%s1842_s2 + $0x118] sm:$0xff]  ;;  %v467_v13 = vpop.f32.mrf.mxu0 }
  0xbc   : > { %696 = vmatpush.msra.mxu2 %v1267_v50  ;;  %v472_v24 = vadd.f32 %v467_v13, %v368_v15  ;;  %v900_v13 = vld [vmem:[%s1845_s5] sm:$0xff] }
  0xbd   : > { %v1344_v59 = vpop.eup %1343  ;;  %v1243_v60 = vmul.f32 -1.442695, %v524_v37 }
  0xbe   : > { %v1346_v61 = vpop.eup %1345  ;;  %v535_v63 = vadd.f32 1.0, %v1344_v59  ;;  %697 = vmatpush.msra.mxu2 %v1266_v1  ;;  %v513_v29 = vadd.f32 %v1337_v56, %v472_v24  ;;  %v869_v1 = vld [vmem:[%s1844_s4 + $0x30] sm:$0xff] }
  0xbf   : > { %v538_v0 = vmul.f32 %v1346_v61, %v1690_v42  ;;  %1347 = vpow2.f32 %v1243_v60  ;;  %vm543_vm3 = vweird.f32 %v1346_v61 }
  0xc0   : > { %1349 = vrcp.f32 %v535_v63  ;;  %698 = vmatpush.msra.mxu2 %v1265_v4  ;;  %vm544_vm5 = vmor %vm542_vm4, %vm543_vm3  ;;  %v563_v26 = vand.u32 2147483648, %v535_v63  ;;  %v561_v28 = vand.u32 2147483647, %v535_v63  ;;  %vm557_vm9 = vweird.f32 %v535_v63  ;;  %v866_v4 = vld [vmem:[%s1844_s4 + $0x18] sm:$0xff] }
  0xc1   : > { %v539_v3 = vsub.f32 1.0, %v538_v0  ;;  %1351 = vtanh.f32 %v511_v62  ;;  %v870_v0 = vld [vmem:[%s1844_s4 + $0x38] sm:$0xff] }
  0xc2   : > { %699 = vmatpush.msra.mxu2 %v1264_v39  ;;  %v564_v57 = vor.u32 1.1754944e-38, %v563_v26  ;;  %vm562_vm11 = vcmp.eq.f32.partialorder %v561_v28, 8.507059e+37  ;;  %v864_v39 = vld [vmem:[%s1844_s4 + $0x8] sm:$0xff] }
  0xc3   : > { %v540_v7 = vmul.f32 %v1346_v61, %v539_v3  ;;  %v867_v3 = vld [vmem:[%s1844_s4 + $0x20] sm:$0xff] }
  0xc5   : > { %v1348_v43 = vpop.eup %1347  ;;  %v541_v9 = vadd.f32 %v1346_v61, %v540_v7 }
  0xc6   : > { %v1350_v10 = vpop.eup %1349  ;;  %v536_v12 = vadd.f32 1.0, %v1348_v43 }
  0xc7   : > { %v553_v18 = vmul.f32 %v1350_v10, %v535_v63  ;;  %v545_v19 = vsel %vm544_vm5, %v1346_v61, %v541_v9  ;;  %v1352_v20 = vpop.eup %1351  ;;  %vm558_vm8 = vweird.f32 %v1350_v10  ;;  %v1339_v9 = vld [vmem:[%s1843_s3 + $0x3] ss:$0 sm:$0xff] }
  0xc8   : > { %1353 = vrcp.f32 %v536_v12  ;;  %v550_v21 = vsel %vm547_vm6, %v549_v14, %v545_v19  ;;  %vm559_vm10 = vmor %vm557_vm9, %vm558_vm8  ;;  %v576_v42 = vand.u32 2147483647, %v536_v12  ;;  %v578_v44 = vand.u32 2147483648, %v536_v12 }
  0xc9   : > { %v554_v22 = vsub.f32 1.0, %v553_v18  ;;  %v582_v25 = vmul.f32 %v1352_v20, %v550_v21  ;;  %1355 = vtanh.f32 %v512_v11  ;;  %vm572_vm14 = vweird.f32 %v536_v12 }
  0xca   : > { %1357 = vtanh.f32 %v513_v29  ;;  %v579_v53 = vor.u32 1.1754944e-38, %v578_v44  ;;  %vm577_vm2 = vcmp.eq.f32.partialorder %v576_v42, 8.507059e+37 }
  0xcb   : > { %1262 = vmatmul.msk.f32.vlgmr.msrb.gmra.mxu3 %vm620_vm7, %v582_v25  ;;  %v555_v27 = vmul.f32 %v1350_v10, %v554_v22  ;;  %v615_v40 = vrot.slane %v582_v25, 1  ;;  %v739_v41 = vrot.slane %v582_v25, 2 }
  0xcc   : > { %923 = vmatpush.msrb.mxu3 %v900_v13 }
  0xcd   : > { %v556_v30 = vadd.f32 %v1350_v10, %v555_v27 }
  0xce   : > { %v1354_v45 = vpop.eup %1353 }
  0xcf   : > { %v568_v31 = vmul.f32 %v1354_v45, %v536_v12  ;;  %v560_v32 = vsel %vm559_vm10, %v1350_v10, %v556_v30  ;;  %v1356_v33 = vpop.eup %1355  ;;  %vm573_vm13 = vweird.f32 %v1354_v45  ;;  %v863_v10 = vld [vmem:[%s1844_s4] sm:$0xff] }
  0xd0   : > { %v565_v34 = vsel %vm562_vm11, %v564_v57, %v560_v32  ;;  %vm574_vm15 = vmor %vm572_vm14, %vm573_vm13  ;;  %v1358_v54 = vpop.eup %1357  ;;  %v1338_v30 = vld [vmem:[%s1843_s3 + $0x2] ss:$0 sm:$0xff]  ;;  %vm901_vm11 = vcmask 64512  }
  0xd1   : > { %v569_v35 = vsub.f32 1.0, %v568_v31  ;;  %v583_v36 = vmul.f32 %v1356_v33, %v565_v34 }
  0xd3   : > { %1263 = vmatmul.msk.f32.gmra.mxu3 %vm620_vm7, %v583_v36  ;;  %v616_v46 = vrot.slane %v583_v36, 1  ;;  %v740_v47 = vrot.slane %v583_v36, 2  ;;  %v570_v48 = vmul.f32 %v1354_v45, %v569_v35 }
  0xd5   : > { %v617_v49 = vsel %vm614_vm12, %v615_v40, %v616_v46  ;;  %v741_v51 = vsel %vm299_vm1, %v739_v41, %v740_v47  ;;  %v571_v52 = vadd.f32 %v1354_v45, %v570_v48 }
  0xd6   : > { %1260 = vmatmul.msk.f32.vlgmr.msrb.gmra.mxu2 %vm620_vm7, %v617_v49  ;;  %1284 = vmatmul.msk.f32.vlgmr.msra.gmra.mxu0 %vm620_vm7, %v741_v51 }
  0xd7   : > { %1294 = vmatmul.msk.f32.vlgmr.msra.gmra.mxu1 %vm620_vm7, %v741_v51  ;;  %v575_v55 = vsel %vm574_vm15, %v1354_v45, %v571_v52  ;;  %885 = vmatpush.msrb.mxu2 %v870_v0 }
  0xd8   : > { %v580_v56 = vsel %vm577_vm2, %v579_v53, %v575_v55 }
  0xd9   : > { %v584_v37 = vmul.f32 %v1358_v54, %v580_v56  ;;  %886 = vmatpush.msrb.mxu2 %v869_v1 }
  0xdb   : > { %1274 = vmatmul.msk.f32.vlgmr.msra.gmra.mxu3 %vm620_vm7, %v582_v25  ;;  %v618_v38 = vrot.slane %v584_v37, 1  ;;  %v742_v58 = vrot.slane %v584_v37, 2  ;;  %887 = vmatpush.msrb.mxu2 %v868_v2 }
  0xdd   : > { %v619_v59 = vsel %vm614_vm12, %v616_v46, %v618_v38  ;;  %v743_v60 = vsel %vm299_vm1, %v740_v47, %v742_v58  ;;  %888 = vmatpush.msrb.mxu2 %v867_v3 }
  0xde   : > { %1261 = vmatmul.msk.f32.gmra.mxu2 %vm620_vm7, %v619_v59  ;;  %1285 = vmatmul.msk.f32.gmra.mxu0 %vm620_vm7, %v743_v60 }
  0xdf   : > { %1295 = vmatmul.msk.f32.gmra.mxu1 %vm620_vm7, %v743_v60  ;;  %889 = vmatpush.msrb.mxu2 %v866_v4 }
  0xe1   : > { %890 = vmatpush.msrb.mxu2 %v865_v6  ;;  %v934_v6 = vld [vmem:[%s1846_s6] sm:$0xff] }
  0xe3   : > { %1275 = vmatmul.msk.f32.gmra.mxu3 %vm620_vm7, %v583_v36  ;;  %891 = vmatpush.msrb.mxu2 %v864_v39 }
  0xe5   : > { %892 = vmatpush.msrb.mxu2 %v863_v10 }
  0xe6   : > { %1272 = vmatmul.msk.f32.vlgmr.msra.gmra.mxu2 %vm620_vm7, %v617_v49 }
  0xee   : > { %1273 = vmatmul.msk.f32.gmra.mxu2 %vm620_vm7, %v619_v59 }
 0x14e   : > { %v669_v61 = vpop.f32.mrf.mxu3 }
 0x153   : > { %v765_v28 = vpop.f32.mrf.mxu0 }
 0x154   : > { %v799_v7 = vpop.f32.mrf.mxu1 }
 0x156   : > { %v672_v63 = vpop.f32.mrf.mxu3 }
 0x159   : > { %v642_v62 = vpop.f32.mrf.mxu2 }
 0x15a   : > { %v670_v26 = vadd.f32 %v669_v61, %v642_v62 }
 0x15b   : > { %v768_v35 = vpop.f32.mrf.mxu0 }
 0x15c   : > { %v802_v20 = vpop.f32.mrf.mxu1  ;;  %v771_v29 = vadd.f32 %v765_v28, %v670_v26 }
 0x15e   : > { %v724_v5 = vpop.f32.mrf.mxu3  ;;  %v812_v31 = vadd.f32 %v1338_v30, %v771_v29 }
 0x161   : > { %v645_v50 = vpop.f32.mrf.mxu2 }
 0x162   : > { %v673_v32 = vadd.f32 %v672_v63, %v645_v50 }
 0x164   : > { %v772_v40 = vadd.f32 %v768_v35, %v673_v32 }
 0x166   : > { %v727_v15 = vpop.f32.mrf.mxu3  ;;  %v813_v48 = vadd.f32 %v1338_v30, %v772_v40 }
 0x169   : > { %v701_v8 = vpop.f32.mrf.mxu2 }
 0x16a   : > { %v725_v43 = vadd.f32 %v724_v5, %v701_v8 }
 0x16c   : > { %v805_v11 = vadd.f32 %v799_v7, %v725_v43  ;;  %v935_v43 = vld [vmem:[%s1846_s6 + $0x8] sm:$0xff] }
 0x16e   : > { %v821_v12 = vadd.f32 %v1339_v9, %v805_v11 }
 0x170   : > { %v1298_v14 = vmul.f32 -1.442695, %v821_v12 }
 0x171   : > { %v704_v18 = vpop.f32.mrf.mxu2 }
 0x172   : > { %1359 = vpow2.f32 %v1298_v14  ;;  %v728_v19 = vadd.f32 %v727_v15, %v704_v18 }
 0x174   : > { %v806_v21 = vadd.f32 %v802_v20, %v728_v19 }
 0x176   : > { %v822_v22 = vadd.f32 %v1339_v9, %v806_v21 }
 0x178   : > { %v1360_v24 = vpop.eup %1359  ;;  %v1299_v25 = vmul.f32 -1.442695, %v822_v22 }
 0x179   : > { %v829_v27 = vadd.f32 1.0, %v1360_v24 }
 0x17a   : > { %1361 = vpow2.f32 %v1299_v25 }
 0x17b   : > { %1363 = vrcp.f32 %v829_v27  ;;  %v842_v41 = vand.u32 2147483648, %v829_v27  ;;  %v840_v44 = vand.u32 2147483647, %v829_v27  ;;  %vm836_vm3 = vweird.f32 %v829_v27 }
 0x17d   : > { %v843_v49 = vor.u32 1.1754944e-38, %v842_v41  ;;  %vm841_vm5 = vcmp.eq.f32.partialorder %v840_v44, 8.507059e+37  ;;  %v1305_v41 = vld [vmem:[%s1846_s6 + $0x18] sm:$0xff] }
 0x180   : > { %v1362_v45 = vpop.eup %1361 }
 0x181   : > { %v1364_v57 = vpop.eup %1363  ;;  %v830_v33 = vadd.f32 1.0, %v1362_v45 }
 0x182   : > { %v832_v34 = vmul.f32 %v1364_v57, %v829_v27  ;;  %vm837_vm1 = vweird.f32 %v1364_v57 }
 0x183   : > { %1365 = vrcp.f32 %v830_v33  ;;  %vm838_vm4 = vmor %vm836_vm3, %vm837_vm1  ;;  %v857_v37 = vand.u32 2147483648, %v830_v33  ;;  %v855_v58 = vand.u32 2147483647, %v830_v33  ;;  %vm851_vm8 = vweird.f32 %v830_v33 }
 0x184   : > { %v833_v36 = vsub.f32 1.0, %v832_v34  ;;  %1367 = vtanh.f32 %v812_v31 }
 0x185   : > { %1369 = vtanh.f32 %v813_v48  ;;  %v858_v60 = vor.u32 1.1754944e-38, %v857_v37  ;;  %vm856_vm10 = vcmp.eq.f32.partialorder %v855_v58, 8.507059e+37  ;;  %v1317_v58 = vld [vmem:[%s1841_s1 + $0xd8] sm:$0xff] }
 0x186   : > { %v834_v42 = vmul.f32 %v1364_v57, %v833_v36  ;;  %v1304_v36 = vld [vmem:[%s1846_s6 + $0x10] sm:$0xff]  ;;  %1095 = vmatpush.msra.mxu2 %v1317_v58 }
 0x188   : > { %v835_v46 = vadd.f32 %v1364_v57, %v834_v42 }
 0x189   : > { %v1366_v47 = vpop.eup %1365 }
 0x18a   : > { %v839_v51 = vsel %vm838_vm4, %v1364_v57, %v835_v46  ;;  %v847_v52 = vmul.f32 %v1366_v47, %v830_v33  ;;  %v1368_v53 = vpop.eup %1367  ;;  %vm852_vm6 = vweird.f32 %v1366_v47 }
 0x18b   : > { %v844_v54 = vsel %vm841_vm5, %v843_v49, %v839_v51  ;;  %vm853_vm9 = vmor %vm851_vm8, %vm852_vm6  ;;  %v1370_v62 = vpop.eup %1369  ;;  %vm1011_vm5 = vcmask 130048   ;;  %vm1073_vm6 = vcmask 1041408  }
 0x18c   : > { %v861_v55 = vmul.f32 %v1368_v53, %v844_v54  ;;  %v848_v56 = vsub.f32 1.0, %v847_v52 }
 0x18e   : > { %1300 = vmatmul.msk.f32.vlgmr.msrb.gmra.mxu2 %vm620_vm7, %v861_v55  ;;  %v849_v38 = vmul.f32 %v1366_v47, %v848_v56 }
 0x190   : > { %v850_v59 = vadd.f32 %v1366_v47, %v849_v38 }
 0x192   : > { %v854_v61 = vsel %vm853_vm9, %v1366_v47, %v850_v59  ;;  %v1316_v59 = vld [vmem:[%s1841_s1 + $0xd0] sm:$0xff] }
 0x193   : > { %v859_v63 = vsel %vm856_vm10, %v858_v60, %v854_v61  ;;  %1096 = vmatpush.msra.mxu2 %v1316_v59  ;;  %v1315_v60 = vld [vmem:[%s1841_s1 + $0xc8] sm:$0xff]  ;;  %v1074_v61 = vrot.slane %v1498_v16, 6 }
 0x194   : > { %v862_v0 = vmul.f32 %v1370_v62, %v859_v63  ;;  %v1075_v62 = vrot.slane %v1500_v17, 6  ;;  %v1314_v63 = vld [vmem:[%s1841_s1 + $0xc0] sm:$0xff] }
 0x195   : > { %1097 = vmatpush.msra.mxu2 %v1315_v60 }
 0x196   : > { %1301 = vmatmul.msk.f32.gmra.mxu2 %vm620_vm7, %v862_v0  ;;  %1126 = vmatpush.msra.mxu3 %v862_v0  ;;  %v1076_v0 = vsel %vm1073_vm6, %v1074_v61, %v1075_v62 }
 0x197   : > { %1098 = vmatpush.msra.mxu2 %v1314_v63 }
 0x198   : > { %1127 = vmatpush.msra.mxu3 %v861_v55 }
 0x19e   : > { %1319 = vmatmul.msk.f32.vlgmr.msra.gmra.mxu2 %vm305_vm0, %v1076_v0 }
 0x211   : > { %v894_v50 = vpop.f32.mrf.mxu2 }
 0x212   : > { %1302 = vmatmul.msk.f32.vlgmr.msrb.gmra.mxu3 %vm901_vm11, %v894_v50 }
 0x219   : > { %v897_v1 = vpop.f32.mrf.mxu2 }
 0x21a   : > { %938 = vrot.lane.b32.xlu0 %v897_v1, %s1395_s9  ;;  %1303 = vmatmul.msk.f32.gmra.mxu3 %vm901_vm11, %v897_v1 }
 0x222   : > { %936 = vrot.lane.b32.xlu0 %v894_v50, %s1395_s9  ;;  %v1077_v50 = vrot.slane %v1515_v23, 6  ;;  %v1340_v23 = vld [vmem:[%s1843_s3 + $0x4] ss:$0 sm:$0xff] }
 0x224   : > { %v1078_v1 = vsel %vm1073_vm6, %v1075_v62, %v1077_v50 }
 0x225   : > { %1320 = vmatmul.msk.f32.gmra.mxu2 %vm305_vm0, %v1078_v1 }
 0x28c   : > { %v939_v2 = vpop.permute.xlu0 %938 }
 0x28d   : > { %1306 = vmatpush.xpose.msk.msrb.mxu0 %vm901_vm11, %v939_v2 }
 0x294   : > { %v937_v3 = vpop.permute.xlu0 %936 }
 0x295   : > { %v925_v4 = vpop.f32.mrf.mxu3  ;;  %1307 = vmatpush.xpose.msk.msrb.mxu0 %vm901_vm11, %v937_v3 }
 0x298   : > { %1308 = vmatmul.msk.f32.vlgmr.msrb.gmra.mxu0 %vm901_vm11, %v925_v4 }
 0x29d   : > { %v928_v5 = vpop.f32.mrf.mxu3 }
 0x2a0   : > { %1309 = vmatmul.msk.f32.gmra.mxu0 %vm901_vm11, %v928_v5 }
 0x315   : > { %v967_v7 = vpop.f32.mrf.mxu0 }
 0x316   : > { %v968_v8 = vadd.f32 %v967_v7, %v934_v6  ;;  %v1100_v6 = vpop.f32.mrf.mxu2 }
 0x317   : > { %v1101_v7 = vadd.f32 %v1340_v23, %v1100_v6 }
 0x318   : > { %v1310_v39 = vmul.f32 -1.442695, %v968_v8 }
 0x31a   : > { %1371 = vpow2.f32 %v1310_v39 }
 0x31d   : > { %v970_v9 = vpop.f32.mrf.mxu0 }
 0x31e   : > { %v971_v10 = vadd.f32 %v970_v9, %v935_v43  ;;  %v1103_v43 = vpop.f32.mrf.mxu2 }
 0x320   : > { %v1372_v11 = vpop.eup %1371  ;;  %v1311_v12 = vmul.f32 -1.442695, %v971_v10  ;;  %v1104_v10 = vadd.f32 %v1340_v23, %v1103_v43 }
 0x321   : > { %v979_v13 = vadd.f32 1.0, %v1372_v11 }
 0x322   : > { %1373 = vpow2.f32 %v1311_v12 }
 0x323   : > { %1375 = vrcp.f32 %v979_v13  ;;  %vm986_vm14 = vweird.f32 %v979_v13  ;;  %v992_v30 = vand.u32 2147483648, %v979_v13  ;;  %v990_v57 = vand.u32 2147483647, %v979_v13 }
 0x325   : > { %v993_v35 = vor.u32 1.1754944e-38, %v992_v30  ;;  %vm991_vm4 = vcmp.eq.f32.partialorder %v990_v57, 8.507059e+37 }
 0x328   : > { %v1374_v14 = vpop.eup %1373 }
 0x329   : > { %v1376_v15 = vpop.eup %1375  ;;  %v980_v18 = vadd.f32 1.0, %v1374_v14 }
 0x32a   : > { %v982_v19 = vmul.f32 %v1376_v15, %v979_v13  ;;  %vm987_vm12 = vweird.f32 %v1376_v15 }
 0x32b   : > { %1377 = vrcp.f32 %v980_v18  ;;  %v1007_v26 = vand.u32 2147483648, %v980_v18  ;;  %v1005_v28 = vand.u32 2147483647, %v980_v18  ;;  %vm1001_vm15 = vweird.f32 %v980_v18  ;;  %vm988_vm2 = vmor %vm986_vm14, %vm987_vm12 }
 0x32c   : > { %v983_v20 = vsub.f32 1.0, %v982_v19 }
 0x32d   : > { %v1008_v31 = vor.u32 1.1754944e-38, %v1007_v26  ;;  %vm1006_vm3 = vcmp.eq.f32.partialorder %v1005_v28, 8.507059e+37 }
 0x32e   : > { %v984_v24 = vmul.f32 %v1376_v15, %v983_v20 }
 0x330   : > { %v985_v29 = vadd.f32 %v1376_v15, %v984_v24 }
 0x331   : > { %v1378_v21 = vpop.eup %1377 }
 0x332   : > { %v997_v22 = vmul.f32 %v1378_v21, %v980_v18  ;;  %vm1002_vm13 = vweird.f32 %v1378_v21  ;;  %v989_v33 = vsel %vm988_vm2, %v1376_v15, %v985_v29 }
 0x333   : > { %vm1003_vm1 = vmor %vm1001_vm15, %vm1002_vm13  ;;  %v994_v40 = vsel %vm991_vm4, %v993_v35, %v989_v33 }
 0x334   : > { %v998_v25 = vsub.f32 1.0, %v997_v22 }
 0x336   : > { %v999_v27 = vmul.f32 %v1378_v21, %v998_v25 }
 0x338   : > { %v1000_v45 = vadd.f32 %v1378_v21, %v999_v27 }
 0x33a   : > { %v1004_v32 = vsel %vm1003_vm1, %v1378_v21, %v1000_v45 }
 0x33b   : > { %v1009_v34 = vsel %vm1006_vm3, %v1008_v31, %v1004_v32 }
 0x33c   : > { %1032 = vmatpush.msrb.mxu1 %v1009_v34 }
 0x33e   : > { %1033 = vmatpush.msrb.mxu1 %v994_v40 }
 0x33f   : > { %1312 = vmatmul.msk.f32.vlgmr.msrb.gmra.mxu1 %vm1011_vm5, %v1304_v36 }
 0x347   : > { %1313 = vmatmul.msk.f32.gmra.mxu1 %vm1011_vm5, %v1305_v41 }
 0x3bc   : > { %v1035_v42 = vpop.f32.mrf.mxu1 }
 0x3bd   : > { %v1041_v44 = vsel %vm1011_vm5, %v1035_v42, -inf }
 0x3be   : > { %1042 = vmax.xlane.f32.xlu1 %v1041_v44 }
 0x3c4   : > { %v1038_v46 = vpop.f32.mrf.mxu1 }
 0x3c5   : > { %v1044_v47 = vsel %vm1011_vm5, %v1038_v46, -inf }
 0x3c6   : > { %1045 = vmax.xlane.f32.xlu1 %v1044_v47 }
 0x431   : > { %v1043_v48 = vpop.xlane.xlu1 %1042 }
 0x432   : > { %v1047_v49 = vsub.f32 %v1035_v42, %v1043_v48 }
 0x434   : > { %v1049_v51 = vmul.f32 1.442695, %v1047_v49 }
 0x436   : > { %1379 = vpow2.f32 %v1049_v51 }
 0x439   : > { %v1046_v52 = vpop.xlane.xlu1 %1045 }
 0x43a   : > { %v1048_v53 = vsub.f32 %v1038_v46, %v1046_v52 }
 0x43c   : > { %v1380_v54 = vpop.eup %1379  ;;  %v1051_v55 = vmul.f32 1.442695, %v1048_v53 }
 0x43d   : > { %v1053_v56 = vsel %vm1011_vm5, %v1380_v54, 0.0 }
 0x43e   : > { %1381 = vpow2.f32 %v1051_v55  ;;  %1054 = vadd.xlane.f32.xlu2 %v1053_v56 }
 0x444   : > { %v1382_v37 = vpop.eup %1381 }
 0x445   : > { %v1056_v38 = vsel %vm1011_vm5, %v1382_v37, 0.0 }
 0x446   : > { %1057 = vadd.xlane.f32.xlu2 %v1056_v38 }
 0x4b1   : > { %v1055_v2 = vpop.xlane.xlu2 %1054 }
 0x4b2   : > { %1383 = vrcp.f32 %v1055_v2 }
 0x4b8   : > { %v1384_v16 = vpop.eup %1383 }
 0x4b9   : > { %v1061_v3 = vmul.f32 %v1384_v16, %v1380_v54  ;;  %v1058_v17 = vpop.xlane.xlu2 %1057 }
 0x4ba   : > { %1385 = vrcp.f32 %v1058_v17 }
 0x4bb   : > { %1321 = vmatmul.msk.f32.vlgmr.msra.gmra.mxu3 %vm1011_vm5, %v1061_v3 }
 0x4c0   : > { %v1386_v4 = vpop.eup %1385 }
 0x4c1   : > { %v1062_v5 = vmul.f32 %v1386_v4, %v1382_v37 }
 0x4c3   : > { %1322 = vmatmul.msk.f32.gmra.mxu3 %vm1011_vm5, %v1062_v5 }
 0x53e   : > { %v1129_v8 = vpop.f32.mrf.mxu3 }
 0x53f   : > { %v1130_v39 = vadd.f32 %v1129_v8, %v1101_v7 }
 0x541   : > { %v1135_v9 = vmul.f32 0.999995, %v1130_v39 }
 0x543   : > { %1137 = vst.msk [vmem:[%s278_s10] sm:$0xff] %vm620_vm7, %v1135_v9 }
 0x546   : > { %v1132_v11 = vpop.f32.mrf.mxu3 }
 0x547   : > { %v1133_v12 = vadd.f32 %v1132_v11, %v1104_v10 }
 0x549   : > { %v1136_v13 = vmul.f32 0.999995, %v1133_v12 }
 0x54b   : > { %1138 = vst.msk [vmem:[%s278_s10 + $0x8] sm:$0xff] %vm620_vm7, %v1136_v13 }
 0x54c PF: > { %s17_s24 = sadd.s32 1, %s1393_s24  }
 0x54d   : > { %p14_p4 = scmp.ge.s32.totalorder %s17_s24, 4  }
 0x54f   :  { %16 = sbr.rel (!%p14_p4) target bundleno = 1 (0x1), region = 94 }

</bundles_post_ra>
